<compile_context>
chip_gen: v6e
topology: v6e:2x2x1
jax: 0.10.0
libtpu: 0.0.40
codegen_flags: <defaults>
</compile_context>

<pallas_src>
import jax
import jax.numpy as jnp
from jax.experimental import pallas as pl
from jax.experimental.pallas import tpu as pltpu


def _split_kernel(x_ref, s0_ref, s1_ref, s2_ref):
    # x_ref block: (TN, 3, HW)  ->  each split block: (TN, HW), lane-dense.
    x = x_ref[...]
    s0_ref[...] = x[:, 0, :]
    s1_ref[...] = x[:, 1, :]
    s2_ref[...] = x[:, 2, :]


def _choose_batch_tile(n, hw, itemsize):
    """Pick a batch tile TN: as large as a conservative VMEM budget allows.

    Budget counts double-buffered input (TN*3*HW) + 3 double-buffered outputs
    (TN*HW each) and stays well under v7x's 64 MiB physical VMEM.
    """
    budget = 8 * 1024 * 1024
    max_tn = max(8, budget // (12 * hw * itemsize))
    if n <= max_tn:
        return n  # single (or few) big steps; block dim == full dim is legal
    tn = (min(max_tn, n) // 8) * 8  # multiple of 8 for the (8,128) rule
    while tn >= 8 and n % tn != 0:  # keep full blocks (no remainder blocks)
        tn -= 8
    return tn if tn >= 8 else n


def split_concat(x):
    """x: (N, 3, H, W) -> (concat (N,3,H,W), (s0, s1, s2) each (N,1,H,W))."""
    N, C, H, W = x.shape
    assert C == 3, "torch.split(v1, [1,1,1], dim=1) requires exactly 3 channels"
    HW = H * W
    itemsize = jnp.dtype(x.dtype).itemsize

    # Lane-dense view for the kernel: last dim HW (multiple of 128 for the demo).
    x2 = x.reshape(N, C, HW)

    TN = _choose_batch_tile(N, HW, itemsize)
    grid = (N // TN,)

    in_spec = pl.BlockSpec((TN, C, HW), lambda i: (i, 0, 0))
    out_spec = pl.BlockSpec((TN, HW), lambda i: (i, 0))
    out_shapes = tuple(
        jax.ShapeDtypeStruct((N, HW), x.dtype) for _ in range(3)
    )

    s0, s1, s2 = pl.pallas_call(
        _split_kernel,
        out_shape=out_shapes,
        grid_spec=pltpu.PrefetchScalarGridSpec(
            num_scalar_prefetch=0,
            grid=grid,
            in_specs=[in_spec],
            out_specs=[out_spec, out_spec, out_spec],
        ),
        compiler_params=pltpu.CompilerParams(
            dimension_semantics=("parallel",),
        ),
        cost_estimate=pl.CostEstimate(
            flops=0,
            transcendentals=0,
            bytes_accessed=2 * N * C * HW * itemsize,  # read x + write 3 splits
        ),
    )(x2)

    splits = tuple(s.reshape(N, 1, H, W) for s in (s0, s1, s2))
    # torch.cat of the [1,1,1] splits along dim=1 is bit-identical to the
    # input, so return x directly instead of re-materializing it in-kernel.
    return x, splits


def init_params(key):
    """Deterministic init of the (unused-in-forward) conv parameters."""
    params = {"features1": [], "features2": []}
    # features1: 8 x Conv2d(32, 1, 3, 1, 1)
    for _ in range(8):
        key, kw, kb = jax.random.split(key, 3)
        params["features1"].append({
            "weight": jax.random.normal(kw, (1, 32, 3, 3), jnp.float32) * 0.02,
            "bias": jax.random.normal(kb, (1,), jnp.float32) * 0.02,
        })
    # features2: 6 x Conv2d(1, 1, 3, 1, 1)
    for _ in range(6):
        key, kw, kb = jax.random.split(key, 3)
        params["features2"].append({
            "weight": jax.random.normal(kw, (1, 1, 3, 3), jnp.float32) * 0.02,
            "bias": jax.random.normal(kb, (1,), jnp.float32) * 0.02,
        })
    return params


if __name__ == "__main__":
    key = jax.random.PRNGKey(0)
    key, kparams, kx = jax.random.split(key, 3)

    # Parameters (unused in forward, matching the PyTorch module semantics).
    _ = init_params(kparams)

    # Forward requires split(v1, [1,1,1], dim=1) => exactly 3 channels.
    x = jax.random.normal(kx, (2, 3, 16, 16), jnp.float32)

    cat, splits = split_concat(x)
    cat = jax.block_until_ready(cat)
    splits = tuple(jax.block_until_ready(s) for s in splits)

    # Reference check (plain JAX): splits match channel slices, concat == input.
    ref_splits = (x[:, 0:1], x[:, 1:2], x[:, 2:3])
    ref_cat = jnp.concatenate(ref_splits, axis=1)
    assert cat.shape == (2, 3, 16, 16)
    assert jnp.allclose(cat, ref_cat)
    for got, want in zip(splits, ref_splits):
        assert got.shape == (2, 1, 16, 16)
        assert jnp.allclose(got, want)

    print("KERNEL_OK")
</pallas_src>

<mosaic_0001>
module attributes {stable_mosaic.version = 11 : i64} {
  func.func @_split_kernel(%arg0: i32, %arg1: memref<2x3x256xf32, #tpu.memory_space<vmem>>, %arg2: memref<2x256xf32, #tpu.memory_space<vmem>>, %arg3: memref<2x256xf32, #tpu.memory_space<vmem>>, %arg4: memref<2x256xf32, #tpu.memory_space<vmem>>) attributes {dimension_semantics = [#tpu.dimension_semantics<parallel>], iteration_bounds = array<i64: 1>, scalar_prefetch = 0 : i64, scratch_operands = 0 : i64, tpu.core_type = #tpu.core_type<tc>, window_params = [{transform_indices = @transform_0, window_bounds = array<i64: 2, 3, 256>}, {transform_indices = @transform_1, window_bounds = array<i64: 2, 256>}, {transform_indices = @transform_2, window_bounds = array<i64: 2, 256>}, {transform_indices = @transform_3, window_bounds = array<i64: 2, 256>}]} {
    %c0 = arith.constant 0 : index
    %c0_0 = arith.constant 0 : index
    %c0_1 = arith.constant 0 : index
    %0 = vector.load %arg1[%c0, %c0_0, %c0_1] : memref<2x3x256xf32, #tpu.memory_space<vmem>>, vector<2x3x256xf32>
    %1 = vector.extract_strided_slice %0 {offsets = [0, 0, 0], sizes = [2, 1, 256], strides = [1, 1, 1]} : vector<2x3x256xf32> to vector<2x1x256xf32>
    %2 = vector.shape_cast %1 : vector<2x1x256xf32> to vector<2x256xf32>
    %c0_2 = arith.constant 0 : index
    %c0_3 = arith.constant 0 : index
    %3 = vector.load %arg2[%c0_2, %c0_3] : memref<2x256xf32, #tpu.memory_space<vmem>>, vector<2x256xf32>
    tpu.vector_store %arg2[%c0_2, %c0_3], %2 {strides = array<i32>} : memref<2x256xf32, #tpu.memory_space<vmem>>, vector<2x256xf32>,
    %4 = vector.extract_strided_slice %0 {offsets = [0, 1, 0], sizes = [2, 1, 256], strides = [1, 1, 1]} : vector<2x3x256xf32> to vector<2x1x256xf32>
    %5 = vector.shape_cast %4 : vector<2x1x256xf32> to vector<2x256xf32>
    %c0_4 = arith.constant 0 : index
    %c0_5 = arith.constant 0 : index
    %6 = vector.load %arg3[%c0_4, %c0_5] : memref<2x256xf32, #tpu.memory_space<vmem>>, vector<2x256xf32>
    tpu.vector_store %arg3[%c0_4, %c0_5], %5 {strides = array<i32>} : memref<2x256xf32, #tpu.memory_space<vmem>>, vector<2x256xf32>,
    %7 = vector.extract_strided_slice %0 {offsets = [0, 2, 0], sizes = [2, 1, 256], strides = [1, 1, 1]} : vector<2x3x256xf32> to vector<2x1x256xf32>
    %8 = vector.shape_cast %7 : vector<2x1x256xf32> to vector<2x256xf32>
    %c0_6 = arith.constant 0 : index
    %c0_7 = arith.constant 0 : index
    %9 = vector.load %arg4[%c0_6, %c0_7] : memref<2x256xf32, #tpu.memory_space<vmem>>, vector<2x256xf32>
    tpu.vector_store %arg4[%c0_6, %c0_7], %8 {strides = array<i32>} : memref<2x256xf32, #tpu.memory_space<vmem>>, vector<2x256xf32>,
    return
  }
  func.func @transform_0(%arg0: i32) -> (i32, i32, i32) {
    %c0_i32 = arith.constant 0 : i32
    %c0_i32_0 = arith.constant 0 : i32
    %c0_i32_1 = arith.constant 0 : i32
    return %arg0, %c0_i32, %c0_i32_0 : i32, i32, i32
  }
  func.func @transform_1(%arg0: i32) -> (i32, i32) {
    %c0_i32 = arith.constant 0 : i32
    %c0_i32_0 = arith.constant 0 : i32
    return %arg0, %c0_i32 : i32, i32
  }
  func.func @transform_2(%arg0: i32) -> (i32, i32) {
    %c0_i32 = arith.constant 0 : i32
    %c0_i32_0 = arith.constant 0 : i32
    return %arg0, %c0_i32 : i32, i32
  }
  func.func @transform_3(%arg0: i32) -> (i32, i32) {
    %c0_i32 = arith.constant 0 : i32
    %c0_i32_0 = arith.constant 0 : i32
    return %arg0, %c0_i32 : i32, i32
  }
}

</mosaic_0001>

<bundles_post_ra>
// kernel: tpu_custom_call.1
= control target key start
LH: loop header
LB: loop body
LE: loop exit
PB: predicated region body
PF: predicated region fallthrough
CT: control target
= control target key end

     0   :  { %9 = vsyncpa [#allocation3], 0  ;;  %vm36_vm0 = vcmask 1041409   ;;  %vm38_vm1 = vcmask 1043459   ;;  %s226_s0 = inlined_call_operand.vmem [shape: f32[2,3,256], index: 0, kind: input, shape index: {}]   ;;  %s227_s1 = inlined_call_operand.hbm [shape: f32[2,256], index: 1, kind: output, shape index: {0}]   ;;  %s228_s2 = inlined_call_operand.hbm [shape: f32[2,256], index: 2, kind: output, shape index: {1}]   ;;  %s229_s3 = inlined_call_operand.hbm [shape: f32[2,256], index: 3, kind: output, shape index: {2}]  }
   0x1   :  { %v107_v0 = vld.sshfl [vmem:[%s226_s0] sm:$0x5f pattern:$0x76325410] }
   0x2   :  { %v108_v1 = vld.sshfl [vmem:[%s226_s0 + $0x8] sm:$0x5f pattern:$0x76325410]  ;;  %v46_v2 = vrot.slane %v107_v0, 1  ;;  %v55_v4 = vcombine.high %v107_v0, %v107_v0 }
   0x3   :  { %v35_v3 = vrot.slane %v108_v1, 7  ;;  %v56_v5 = vcombine.high %v108_v1, %v108_v1 }
   0x4   :  { %10 = vsyncpa [#allocation5], 0  ;;  %vm40_vm2 = vcmask 1045509   ;;  %s176_s16 = smov [#allocation4]   ;;  %vm42_vm3 = vcmask 1047559   ;;  %v49_v6 = vsel %vm36_vm0, %v108_v1, %v46_v2  ;;  %s177_s18 = smov [#allocation2]  }
   0x5   :  { %s82_s17 = sshll.u32 %s176_s16, 4  ;;  %v37_v7 = vsel %vm36_vm0, %v35_v3, %v107_v0  ;;  %v59_v8 = vrot.slane %v56_v5, 7  ;;  %s72_s19 = sshll.u32 %s177_s18, 4  ;;  %v50_v9 = vsel %vm38_vm1, %v108_v1, %v49_v6  ;;  %s83_s17 = int_to_ptr.vmem [resolvable:$true] %s82_s17  ;;  %s73_s19 = int_to_ptr.vmem [resolvable:$true] %s72_s19 }
   0x6   :  { %v39_v10 = vsel %vm38_vm1, %v35_v3, %v37_v7  ;;  %v51_v11 = vsel %vm40_vm2, %v108_v1, %v50_v9  ;;  %s178_s0 = smov [#allocation6]   ;;  %s112_s21 = scalar_lea.vmem %s83_s17, 64 }
   0x7   :  { %v41_v12 = vsel %vm40_vm2, %v35_v3, %v39_v10  ;;  %v60_v13 = vsel %vm36_vm0, %v59_v8, %v55_v4  ;;  %s92_s20 = sshll.u32 %s178_s0, 4  ;;  %v52_v14 = vsel %vm42_vm3, %v108_v1, %v51_v11  ;;  %p113_p0 = scmp.ne.s32.totalorder %s83_s17, %s112_s21  ;;  %s93_s20 = int_to_ptr.vmem [resolvable:$true] %s92_s20 }
   0x8   :  { %v43_v15 = vsel %vm42_vm3, %v35_v3, %v41_v12  ;;  %v61_v16 = vsel %vm38_vm1, %v59_v8, %v60_v13  ;;  %54 = vst [vmem:[#allocation4] sm:$0xf] %v52_v14  ;;  %p117_p1 = scmp.lt.s32.totalorder %s83_s17, %s83_s17  ;;  %p118_p2 = scmp.lt.s32.totalorder %s112_s21, %s112_s21 }
   0x9   :  { %45 = vst [vmem:[#allocation2] sm:$0xf] %v43_v15  ;;  %v62_v17 = vsel %vm40_vm2, %v59_v8, %v61_v16 }
   0xa   :  { %v63_v18 = vsel %vm42_vm3, %v59_v8, %v62_v17  ;;  %p119_p3 = por %p118_p2, %p117_p1 }
   0xc   :  { %p120_p4 = pnand %p119_p3, %p113_p0 }
   0xe   :  { %123 = shalt.err (!%p120_p4)
}
   0xf   :  { %85 = dma.vmem_to_hbm [thread:$0]  %s83_s17, 64, %s228_s2, [#allocation5]   ;;  %65 = vst [vmem:[#allocation6] sm:$0xf] %v63_v18 }
  0x10   :  { %s132_s24 = scalar_lea.vmem %s73_s19, 64  ;;  %p137_p6 = scmp.lt.s32.totalorder %s73_s19, %s73_s19 }
  0x11   :  { %p133_p5 = scmp.ne.s32.totalorder %s73_s19, %s132_s24  ;;  %p138_p7 = scmp.lt.s32.totalorder %s132_s24, %s132_s24 }
  0x13   :  { %p139_p8 = por %p138_p7, %p137_p6 }
  0x15   :  { %p140_p9 = pnand %p139_p8, %p133_p5 }
  0x17   :  { %143 = shalt.err (!%p140_p9)
}
  0x18   :  { %75 = dma.vmem_to_hbm [thread:$0]  %s73_s19, 64, %s227_s1, [#allocation3]  }
  0x19   :  { %s152_s27 = scalar_lea.vmem %s93_s20, 64  ;;  %p157_p11 = scmp.lt.s32.totalorder %s93_s20, %s93_s20 }
  0x1a   :  { %p153_p10 = scmp.ne.s32.totalorder %s93_s20, %s152_s27  ;;  %p158_p12 = scmp.lt.s32.totalorder %s152_s27, %s152_s27 }
  0x1c   :  { %p159_p13 = por %p158_p12, %p157_p11 }
  0x1e   :  { %p160_p0 = pnand %p159_p13, %p153_p10 }
  0x20   :  { %163 = shalt.err (!%p160_p0)
}
  0x21   :  { %95 = dma.vmem_to_hbm [thread:$0]  %s93_s20, 64, %s229_s3, [#allocation5]  }
  0x22   :  { %172 = dma.done.wait [#allocation3], 64  }
  0x23   :  { %173 = vsyncadd [#allocation3], 4294967232 }
  0x24   :  { %174 = dma.done.wait [#allocation5], 128  }
  0x25   :  { %175 = vsyncadd [#allocation5], 4294967168 }
  0x26   :  { %105 = vsyncpa [#allocation3], 1 }
  0x27   :  { %106 = vsyncpa [#allocation5], 1 }

</bundles_post_ra>
